<compile_context>
chip_gen: v6e
topology: v6e:2x2x1
jax: 0.10.0
libtpu: 0.0.40
codegen_flags: <defaults>
</compile_context>

<pallas_src>
import functools

import jax
import jax.numpy as jnp
from jax.experimental import pallas as pl
from jax.experimental.pallas import tpu as pltpu


def _round_up(n, m):
    return ((n + m - 1) // m) * m


def _mlp_kernel(in_dim, out_dim, n_mid, cpt, bf16_matmul, *refs):
    """One batch tile of the full MLP forward, transposed (feat, batch) layout.

    refs (n_mid > 0):
      x_ref  : (cpt, in_dim, chunk)        input chunks (batch on lanes)
      wf_ref : (H, in_dim)                 first-layer weight (torch [out,in])
      bf_ref : (H, 1)
      wm_ref : (n_mid, H, H)               stacked middle-layer weights
      bm_ref : (n_mid, H, 1)
      wl_ref : (H, out_dim)                last-layer weight stored as [in,out]
      bl_ref : (out_dim, 1)
      o_ref  : (cpt, out_dim, chunk)
    When n_mid == 0, wm_ref/bm_ref are omitted.
    """
    if n_mid > 0:
        x_ref, wf_ref, bf_ref, wm_ref, bm_ref, wl_ref, bl_ref, o_ref = refs
    else:
        x_ref, wf_ref, bf_ref, wl_ref, bl_ref, o_ref = refs

    mm_in = jnp.bfloat16 if bf16_matmul else jnp.float32

    # Hoist the tiny VMEM-resident parameters out of the chunk loop (JAX does
    # not CSE broadcasts/loads inside the loop).
    wf = wf_ref[...]
    bf = bf_ref[...]
    wl = wl_ref[...]
    bl = bl_ref[...]
    if n_mid > 0:
        wm = wm_ref[...].astype(mm_in)   # (n_mid, H, H)
        bm = bm_ref[...]                 # (n_mid, H, 1)

    def matmul(a, b):
        return jnp.dot(a.astype(mm_in), b.astype(mm_in),
                       preferred_element_type=jnp.float32)

    def chunk_body(c, carry):
        xc = x_ref[c]                                        # (in_dim, chunk)

        # ---- first layer + tanh ----------------------------------------
        if in_dim == 1:
            # K=1 MXU pass is pure systolic latency; VPU outer product instead
            # (the (1,chunk)->(H,chunk) splat is a one-off per chunk).
            h = wf * xc
        else:
            h = matmul(wf, xc)
        h = jnp.tanh(h + bf)

        # ---- middle layers (H x H on the MXU) + tanh --------------------
        for i in range(n_mid):
            h = jnp.tanh(matmul(wm[i], h) + bm[i])

        # ---- last layer, no activation -----------------------------------
        if out_dim == 1:
            # M=1 matmul -> elementwise multiply + sublane reduction (XLU).
            out = jnp.sum(wl * h, axis=0, keepdims=True) + bl
        else:
            out = jax.lax.dot_general(
                wl.astype(mm_in), h.astype(mm_in), (((0,), (0,)), ((), ())),
                preferred_element_type=jnp.float32) + bl

        o_ref[c] = out.astype(o_ref.dtype)
        return carry

    if cpt == 1:
        chunk_body(0, 0)
    else:
        jax.lax.fori_loop(0, cpt, chunk_body, 0, unroll=True)


def mlp_forward(x, weights, biases, *, block_batch=16384, chunk=512,
                bf16_matmul=False):
    """Full MLP forward pass in one Pallas kernel, gridded over the batch.

    x:       [batch, in_dim] float32
    weights: list of [in_i, out_i] float32 (math is x @ W + b, matching
             PyTorch's x @ W_torch.T + b)
    biases:  list of [1, out_i] float32
    block_batch: target batch-tile size (lanes) per grid step.  Large (>=8192)
             is the right call for production PINN/RAR batches on v5e/v6e/v7x
             alike; small batches are automatically split into >=2 grid steps.
    chunk:   register-blocking width (lanes) for the in-kernel layer chain.
    bf16_matmul: feed the MXU bf16 inputs (f32 accumulation).  Optional v6e/v7x
             slack; keep False for full f32 accuracy (default).
    """
    num_layers = len(weights)
    assert num_layers >= 2, "expect at least [in, hidden, out]"
    batch, in_dim = x.shape
    assert weights[0].shape[0] == in_dim
    H = weights[0].shape[1]
    out_dim = weights[-1].shape[1]
    assert weights[-1].shape[0] == H
    for w in weights[1:-1]:
        assert w.shape == (H, H), "all hidden widths must be equal"
    n_mid = num_layers - 2

    # --- kernel-side parameter layout (torch [out, in]: kernel computes W@h) --
    wf = weights[0].T                                        # (H, in_dim)
    bf = biases[0].T                                         # (H, 1)
    wl = weights[-1]                                         # (H, out_dim)
    bl = biases[-1].T                                        # (out_dim, 1)
    if n_mid > 0:
        wm = jnp.stack([w.T for w in weights[1:-1]])         # (n_mid, H, H)
        bm = jnp.stack([b.T for b in biases[1:-1]])          # (n_mid, H, 1)

    # --- batch tiling ---------------------------------------------------------
    # tile_b = chunk * chunks_per_tile is the per-grid-step tile.  Keep tiles
    # big (amortize ~0.35us/step) but guarantee >=2 grid steps whenever the
    # padded batch allows it, so both v7x TensorCores get work and DMA/compute
    # overlap exists.
    chunk = max(128, _round_up(chunk, 128))
    padded0 = _round_up(batch, 128)
    tile_cap = _round_up(pl.cdiv(padded0, 2), 128)           # -> >=2 grid steps
    tile_b = max(128, min(_round_up(block_batch, 128), tile_cap))
    chunk = min(chunk, tile_b)
    tile_b = max(chunk, (tile_b // chunk) * chunk)           # multiple of chunk
    padded_b = _round_up(padded0, tile_b)
    num_tiles = padded_b // tile_b
    cpt = tile_b // chunk                                    # chunks per tile
    n_chunks = padded_b // chunk

    # --- reshape the batch into lane-dense chunks: (n_chunks, feat, chunk) ----
    x_t = x.T                                                # (in_dim, batch)
    if padded_b != batch:
        x_t = jnp.pad(x_t, ((0, 0), (0, padded_b - batch)))
    x3 = x_t.reshape(in_dim, n_chunks, chunk).transpose(1, 0, 2)

    in_specs = [pl.BlockSpec((cpt, in_dim, chunk), lambda i: (i, 0, 0)),
                pl.BlockSpec((H, in_dim), lambda i: (0, 0)),
                pl.BlockSpec((H, 1), lambda i: (0, 0))]
    args = [x3, wf, bf]
    if n_mid > 0:
        in_specs += [pl.BlockSpec((n_mid, H, H), lambda i: (0, 0, 0)),
                     pl.BlockSpec((n_mid, H, 1), lambda i: (0, 0, 0))]
        args += [wm, bm]
    in_specs += [pl.BlockSpec((H, out_dim), lambda i: (0, 0)),
                 pl.BlockSpec((out_dim, 1), lambda i: (0, 0))]
    args += [wl, bl]
    out_spec = pl.BlockSpec((cpt, out_dim, chunk), lambda i: (i, 0, 0))

    grid_spec = pltpu.PrefetchScalarGridSpec(
        num_scalar_prefetch=0,
        grid=(num_tiles,),
        in_specs=in_specs,
        out_specs=out_spec,
    )

    # --- cost estimate + VMEM limit sized from the actual footprint -----------
    dims = [in_dim] + [H] * (n_mid + 1) + [out_dim]
    flops = 2 * padded_b * sum(a * b for a, b in zip(dims[:-1], dims[1:]))
    transcendentals = padded_b * H * (n_mid + 1)
    param_bytes = 4 * sum(int(a.size) for a in args[1:])
    io_bytes = 4 * (int(x3.size) + out_dim * padded_b)
    tile_io_bytes = 4 * (in_dim + out_dim) * tile_b          # one tile, in+out
    vmem_need = param_bytes + 2 * tile_io_bytes + 4 * H * chunk * 8
    vmem_limit = int(min(48 * 1024 * 1024,                   # v7x headroom
                         max(2 * vmem_need, 16 * 1024 * 1024)))

    kernel = functools.partial(_mlp_kernel, in_dim, out_dim, n_mid, cpt,
                               bf16_matmul)

    out3 = pl.pallas_call(
        kernel,
        out_shape=jax.ShapeDtypeStruct((n_chunks, out_dim, chunk), jnp.float32),
        grid_spec=grid_spec,
        compiler_params=pltpu.CompilerParams(
            dimension_semantics=("parallel",),    # batch tiles are independent
            vmem_limit_bytes=vmem_limit,
        ),
        cost_estimate=pl.CostEstimate(
            flops=int(flops),
            transcendentals=int(transcendentals),
            bytes_accessed=int(param_bytes + io_bytes),
        ),
    )(*args)

    out_t = out3.transpose(1, 0, 2).reshape(out_dim, padded_b)
    return out_t[:, :batch].T                                # [batch, out_dim]


def init_params(key, layers):
    """Xavier-normal weights (torch.nn.init.xavier_normal_), zero biases."""
    weights, biases = [], []
    for i in range(len(layers) - 1):
        key, sub = jax.random.split(key)
        fan_in, fan_out = layers[i], layers[i + 1]
        std = jnp.sqrt(2.0 / (fan_in + fan_out))
        w = std * jax.random.normal(sub, (fan_in, fan_out), dtype=jnp.float32)
        b = jnp.zeros((1, fan_out), dtype=jnp.float32)
        weights.append(w)
        biases.append(b)
    return weights, biases


def reference_forward(x, weights, biases):
    h = x
    for i in range(len(weights) - 1):
        h = jnp.tanh(h @ weights[i] + biases[i])
    return h @ weights[-1] + biases[-1]


if __name__ == "__main__":
    # 1d DAE PINN-style network: scalar input (t), scalar output, 3 hidden layers.
    layers = [1, 32, 32, 32, 1]
    batch = 300  # non-multiple of 128: exercises padding, 2-step grid, chunk loop

    key = jax.random.PRNGKey(0)
    key, xkey = jax.random.split(key)
    x = jax.random.uniform(xkey, (batch, layers[0]), dtype=jnp.float32)

    weights, biases = init_params(key, layers)

    # chunk=128 keeps the demo tiny while still exercising the in-kernel chunk
    # loop (cpt=2) and a 2-step grid.  Production PINN/RAR batches (1e4-1e6
    # collocation points) use the defaults (chunk=512, block_batch=16384) on
    # any TPU generation; VMEM is not the constraint anywhere.
    out = mlp_forward(x, weights, biases, chunk=128)
    out = jax.block_until_ready(out)

    ref = reference_forward(x, weights, biases)
    assert out.shape == (batch, layers[-1])
    # TPU f32 matmuls may use bf16 MXU passes at default precision and the
    # kernel uses a transposed accumulation order, so use a tolerant check.
    assert jnp.allclose(out, ref, atol=2e-2, rtol=2e-2), "mismatch vs reference"

    print("KERNEL_OK")
</pallas_src>

<mosaic_0001>
module attributes {stable_mosaic.version = 11 : i64} {
  func.func @_mlp_kernel(%arg0: i32, %arg1: memref<2x1x128xf32, #tpu.memory_space<vmem>>, %arg2: memref<32x1xf32, #tpu.memory_space<vmem>>, %arg3: memref<32x1xf32, #tpu.memory_space<vmem>>, %arg4: memref<2x32x32xf32, #tpu.memory_space<vmem>>, %arg5: memref<2x32x1xf32, #tpu.memory_space<vmem>>, %arg6: memref<32x1xf32, #tpu.memory_space<vmem>>, %arg7: memref<1x1xf32, #tpu.memory_space<vmem>>, %arg8: memref<2x1x128xf32, #tpu.memory_space<vmem>>) attributes {dimension_semantics = [#tpu.dimension_semantics<parallel>], iteration_bounds = array<i64: 2>, scalar_prefetch = 0 : i64, scratch_operands = 0 : i64, tpu.core_type = #tpu.core_type<tc>, window_params = [{transform_indices = @transform_0, window_bounds = array<i64: 2, 1, 128>}, {pipeline_mode = #tpu.pipeline_mode<synchronous>, transform_indices = @transform_1, window_bounds = array<i64: 32, 1>}, {pipeline_mode = #tpu.pipeline_mode<synchronous>, transform_indices = @transform_2, window_bounds = array<i64: 32, 1>}, {pipeline_mode = #tpu.pipeline_mode<synchronous>, transform_indices = @transform_3, window_bounds = array<i64: 2, 32, 32>}, {pipeline_mode = #tpu.pipeline_mode<synchronous>, transform_indices = @transform_4, window_bounds = array<i64: 2, 32, 1>}, {pipeline_mode = #tpu.pipeline_mode<synchronous>, transform_indices = @transform_5, window_bounds = array<i64: 32, 1>}, {pipeline_mode = #tpu.pipeline_mode<synchronous>, transform_indices = @transform_6, window_bounds = array<i64: 1, 1>}, {transform_indices = @transform_7, window_bounds = array<i64: 2, 1, 128>}]} {
    %c0 = arith.constant 0 : index
    %c0_0 = arith.constant 0 : index
    %0 = vector.load %arg2[%c0, %c0_0] : memref<32x1xf32, #tpu.memory_space<vmem>>, vector<32x1xf32>
    %c0_1 = arith.constant 0 : index
    %c0_2 = arith.constant 0 : index
    %1 = vector.load %arg3[%c0_1, %c0_2] : memref<32x1xf32, #tpu.memory_space<vmem>>, vector<32x1xf32>
    %c0_3 = arith.constant 0 : index
    %c0_4 = arith.constant 0 : index
    %2 = vector.load %arg6[%c0_3, %c0_4] : memref<32x1xf32, #tpu.memory_space<vmem>>, vector<32x1xf32>
    %c0_5 = arith.constant 0 : index
    %c0_6 = arith.constant 0 : index
    %3 = vector.load %arg7[%c0_5, %c0_6] : memref<1x1xf32, #tpu.memory_space<vmem>>, vector<1x1xf32>
    %c0_7 = arith.constant 0 : index
    %c0_8 = arith.constant 0 : index
    %c0_9 = arith.constant 0 : index
    %4 = vector.load %arg4[%c0_7, %c0_8, %c0_9] : memref<2x32x32xf32, #tpu.memory_space<vmem>>, vector<2x32x32xf32>
    %c0_10 = arith.constant 0 : index
    %c0_11 = arith.constant 0 : index
    %c0_12 = arith.constant 0 : index
    %5 = vector.load %arg5[%c0_10, %c0_11, %c0_12] : memref<2x32x1xf32, #tpu.memory_space<vmem>>, vector<2x32x1xf32>
    %c0_i32 = arith.constant 0 : i32
    %6 = arith.index_cast %c0_i32 : i32 to index
    %c0_13 = arith.constant 0 : index
    %c0_14 = arith.constant 0 : index
    %7 = vector.load %arg1[%6, %c0_13, %c0_14] : memref<2x1x128xf32, #tpu.memory_space<vmem>>, vector<1x1x128xf32>
    %8 = vector.shape_cast %7 : vector<1x1x128xf32> to vector<1x128xf32>
    %9 = vector.broadcast %0 : vector<32x1xf32> to vector<32x128xf32>
    %10 = vector.broadcast %8 : vector<1x128xf32> to vector<32x128xf32>
    %11 = arith.mulf %9, %10 : vector<32x128xf32>
    %12 = vector.broadcast %1 : vector<32x1xf32> to vector<32x128xf32>
    %13 = arith.addf %11, %12 : vector<32x128xf32>
    %14 = math.tanh %13 : vector<32x128xf32>
    %15 = vector.extract_strided_slice %4 {offsets = [0, 0, 0], sizes = [1, 32, 32], strides = [1, 1, 1]} : vector<2x32x32xf32> to vector<1x32x32xf32>
    %16 = vector.shape_cast %15 : vector<1x32x32xf32> to vector<32x32xf32>
    %cst = arith.constant dense<0.000000e+00> : vector<32x128xf32>
    %17 = tpu.matmul %16, %14, %cst {dimension_numbers = #tpu.dot_dimension_numbers<[1], [0], [0], [1], [0, 0, 1, 1], [], []>} : vector<32x32xf32>, vector<32x128xf32>, vector<32x128xf32> -> vector<32x128xf32>
    %18 = vector.extract_strided_slice %5 {offsets = [0, 0, 0], sizes = [1, 32, 1], strides = [1, 1, 1]} : vector<2x32x1xf32> to vector<1x32x1xf32>
    %19 = vector.shape_cast %18 : vector<1x32x1xf32> to vector<32x1xf32>
    %20 = vector.broadcast %19 : vector<32x1xf32> to vector<32x128xf32>
    %21 = arith.addf %17, %20 : vector<32x128xf32>
    %22 = math.tanh %21 : vector<32x128xf32>
    %23 = vector.extract_strided_slice %4 {offsets = [1, 0, 0], sizes = [1, 32, 32], strides = [1, 1, 1]} : vector<2x32x32xf32> to vector<1x32x32xf32>
    %24 = vector.shape_cast %23 : vector<1x32x32xf32> to vector<32x32xf32>
    %cst_15 = arith.constant dense<0.000000e+00> : vector<32x128xf32>
    %25 = tpu.matmul %24, %22, %cst_15 {dimension_numbers = #tpu.dot_dimension_numbers<[1], [0], [0], [1], [0, 0, 1, 1], [], []>} : vector<32x32xf32>, vector<32x128xf32>, vector<32x128xf32> -> vector<32x128xf32>
    %26 = vector.extract_strided_slice %5 {offsets = [1, 0, 0], sizes = [1, 32, 1], strides = [1, 1, 1]} : vector<2x32x1xf32> to vector<1x32x1xf32>
    %27 = vector.shape_cast %26 : vector<1x32x1xf32> to vector<32x1xf32>
    %28 = vector.broadcast %27 : vector<32x1xf32> to vector<32x128xf32>
    %29 = arith.addf %25, %28 : vector<32x128xf32>
    %30 = math.tanh %29 : vector<32x128xf32>
    %31 = vector.broadcast %2 : vector<32x1xf32> to vector<32x128xf32>
    %32 = arith.mulf %31, %30 : vector<32x128xf32>
    %cst_16 = arith.constant dense<0.000000e+00> : vector<128xf32>
    %33 = vector.multi_reduction <add>, %32, %cst_16 [0] : vector<32x128xf32> to vector<128xf32>
    %34 = vector.shape_cast %33 : vector<128xf32> to vector<1x128xf32>
    %35 = vector.broadcast %3 : vector<1x1xf32> to vector<1x128xf32>
    %36 = arith.addf %34, %35 : vector<1x128xf32>
    %37 = arith.index_cast %c0_i32 : i32 to index
    %c0_17 = arith.constant 0 : index
    %c0_18 = arith.constant 0 : index
    %38 = vector.load %arg8[%37, %c0_17, %c0_18] : memref<2x1x128xf32, #tpu.memory_space<vmem>>, vector<1x1x128xf32>
    %39 = vector.shape_cast %38 : vector<1x1x128xf32> to vector<1x128xf32>
    %40 = vector.shape_cast %36 : vector<1x128xf32> to vector<1x1x128xf32>
    tpu.vector_store %arg8[%37, %c0_17, %c0_18], %40 {strides = array<i32>} : memref<2x1x128xf32, #tpu.memory_space<vmem>>, vector<1x1x128xf32>,
    %c1_i32 = arith.constant 1 : i32
    %41 = arith.index_cast %c1_i32 : i32 to index
    %c0_19 = arith.constant 0 : index
    %c0_20 = arith.constant 0 : index
    %42 = vector.load %arg1[%41, %c0_19, %c0_20] : memref<2x1x128xf32, #tpu.memory_space<vmem>>, vector<1x1x128xf32>
    %43 = vector.shape_cast %42 : vector<1x1x128xf32> to vector<1x128xf32>
    %44 = vector.broadcast %0 : vector<32x1xf32> to vector<32x128xf32>
    %45 = vector.broadcast %43 : vector<1x128xf32> to vector<32x128xf32>
    %46 = arith.mulf %44, %45 : vector<32x128xf32>
    %47 = vector.broadcast %1 : vector<32x1xf32> to vector<32x128xf32>
    %48 = arith.addf %46, %47 : vector<32x128xf32>
    %49 = math.tanh %48 : vector<32x128xf32>
    %50 = vector.extract_strided_slice %4 {offsets = [0, 0, 0], sizes = [1, 32, 32], strides = [1, 1, 1]} : vector<2x32x32xf32> to vector<1x32x32xf32>
    %51 = vector.shape_cast %50 : vector<1x32x32xf32> to vector<32x32xf32>
    %cst_21 = arith.constant dense<0.000000e+00> : vector<32x128xf32>
    %52 = tpu.matmul %51, %49, %cst_21 {dimension_numbers = #tpu.dot_dimension_numbers<[1], [0], [0], [1], [0, 0, 1, 1], [], []>} : vector<32x32xf32>, vector<32x128xf32>, vector<32x128xf32> -> vector<32x128xf32>
    %53 = vector.extract_strided_slice %5 {offsets = [0, 0, 0], sizes = [1, 32, 1], strides = [1, 1, 1]} : vector<2x32x1xf32> to vector<1x32x1xf32>
    %54 = vector.shape_cast %53 : vector<1x32x1xf32> to vector<32x1xf32>
    %55 = vector.broadcast %54 : vector<32x1xf32> to vector<32x128xf32>
    %56 = arith.addf %52, %55 : vector<32x128xf32>
    %57 = math.tanh %56 : vector<32x128xf32>
    %58 = vector.extract_strided_slice %4 {offsets = [1, 0, 0], sizes = [1, 32, 32], strides = [1, 1, 1]} : vector<2x32x32xf32> to vector<1x32x32xf32>
    %59 = vector.shape_cast %58 : vector<1x32x32xf32> to vector<32x32xf32>
    %cst_22 = arith.constant dense<0.000000e+00> : vector<32x128xf32>
    %60 = tpu.matmul %59, %57, %cst_22 {dimension_numbers = #tpu.dot_dimension_numbers<[1], [0], [0], [1], [0, 0, 1, 1], [], []>} : vector<32x32xf32>, vector<32x128xf32>, vector<32x128xf32> -> vector<32x128xf32>
    %61 = vector.extract_strided_slice %5 {offsets = [1, 0, 0], sizes = [1, 32, 1], strides = [1, 1, 1]} : vector<2x32x1xf32> to vector<1x32x1xf32>
    %62 = vector.shape_cast %61 : vector<1x32x1xf32> to vector<32x1xf32>
    %63 = vector.broadcast %62 : vector<32x1xf32> to vector<32x128xf32>
    %64 = arith.addf %60, %63 : vector<32x128xf32>
    %65 = math.tanh %64 : vector<32x128xf32>
    %66 = vector.broadcast %2 : vector<32x1xf32> to vector<32x128xf32>
    %67 = arith.mulf %66, %65 : vector<32x128xf32>
    %cst_23 = arith.constant dense<0.000000e+00> : vector<128xf32>
    %68 = vector.multi_reduction <add>, %67, %cst_23 [0] : vector<32x128xf32> to vector<128xf32>
    %69 = vector.shape_cast %68 : vector<128xf32> to vector<1x128xf32>
    %70 = vector.broadcast %3 : vector<1x1xf32> to vector<1x128xf32>
    %71 = arith.addf %69, %70 : vector<1x128xf32>
    %72 = arith.index_cast %c1_i32 : i32 to index
    %c0_24 = arith.constant 0 : index
    %c0_25 = arith.constant 0 : index
    %73 = vector.load %arg8[%72, %c0_24, %c0_25] : memref<2x1x128xf32, #tpu.memory_space<vmem>>, vector<1x1x128xf32>
    %74 = vector.shape_cast %73 : vector<1x1x128xf32> to vector<1x128xf32>
    %75 = vector.shape_cast %71 : vector<1x128xf32> to vector<1x1x128xf32>
    tpu.vector_store %arg8[%72, %c0_24, %c0_25], %75 {strides = array<i32>} : memref<2x1x128xf32, #tpu.memory_space<vmem>>, vector<1x1x128xf32>,
    %c2_i32 = arith.constant 2 : i32
    return
  }
  func.func @transform_0(%arg0: i32) -> (i32, i32, i32) {
    %c0_i32 = arith.constant 0 : i32
    %c0_i32_0 = arith.constant 0 : i32
    %c0_i32_1 = arith.constant 0 : i32
    return %arg0, %c0_i32, %c0_i32_0 : i32, i32, i32
  }
  func.func @transform_1(%arg0: i32) -> (i32, i32) {
    %c0_i32 = arith.constant 0 : i32
    %c0_i32_0 = arith.constant 0 : i32
    %c0_i32_1 = arith.constant 0 : i32
    return %c0_i32, %c0_i32_0 : i32, i32
  }
  func.func @transform_2(%arg0: i32) -> (i32, i32) {
    %c0_i32 = arith.constant 0 : i32
    %c0_i32_0 = arith.constant 0 : i32
    %c0_i32_1 = arith.constant 0 : i32
    return %c0_i32, %c0_i32_0 : i32, i32
  }
  func.func @transform_3(%arg0: i32) -> (i32, i32, i32) {
    %c0_i32 = arith.constant 0 : i32
    %c0_i32_0 = arith.constant 0 : i32
    %c0_i32_1 = arith.constant 0 : i32
    %c0_i32_2 = arith.constant 0 : i32
    return %c0_i32, %c0_i32_0, %c0_i32_1 : i32, i32, i32
  }
  func.func @transform_4(%arg0: i32) -> (i32, i32, i32) {
    %c0_i32 = arith.constant 0 : i32
    %c0_i32_0 = arith.constant 0 : i32
    %c0_i32_1 = arith.constant 0 : i32
    %c0_i32_2 = arith.constant 0 : i32
    return %c0_i32, %c0_i32_0, %c0_i32_1 : i32, i32, i32
  }
  func.func @transform_5(%arg0: i32) -> (i32, i32) {
    %c0_i32 = arith.constant 0 : i32
    %c0_i32_0 = arith.constant 0 : i32
    %c0_i32_1 = arith.constant 0 : i32
    return %c0_i32, %c0_i32_0 : i32, i32
  }
  func.func @transform_6(%arg0: i32) -> (i32, i32) {
    %c0_i32 = arith.constant 0 : i32
    %c0_i32_0 = arith.constant 0 : i32
    %c0_i32_1 = arith.constant 0 : i32
    return %c0_i32, %c0_i32_0 : i32, i32
  }
  func.func @transform_7(%arg0: i32) -> (i32, i32, i32) {
    %c0_i32 = arith.constant 0 : i32
    %c0_i32_0 = arith.constant 0 : i32
    %c0_i32_1 = arith.constant 0 : i32
    return %arg0, %c0_i32, %c0_i32_0 : i32, i32, i32
  }
}

</mosaic_0001>

<bundles_post_ra>
// kernel: tpu_custom_call.1
= control target key start
LH: loop header
LB: loop body
LE: loop exit
PB: predicated region body
PF: predicated region fallthrough
CT: control target
= control target key end

     0   :  { %s1467_s0 = inlined_call_operand.vmem [shape: f32[4,1,128], index: 0, kind: input, shape index: {}]   ;;  %s1468_s1 = inlined_call_operand.vmem [shape: f32[32,1], index: 1, kind: input, shape index: {}]   ;;  %s1469_s2 = inlined_call_operand.vmem [shape: f32[32,1], index: 2, kind: input, shape index: {}]   ;;  %s1470_s3 = inlined_call_operand.vmem [shape: f32[2,32,32], index: 3, kind: input, shape index: {}]   ;;  %s1471_s4 = inlined_call_operand.vmem [shape: f32[2,32,1], index: 4, kind: input, shape index: {}]   ;;  %s1472_s5 = inlined_call_operand.vmem [shape: f32[32,1], index: 5, kind: input, shape index: {}]   ;;  %s1473_s6 = inlined_call_operand.<no memory space> [shape: f32[1,1], index: 6, kind: input, shape index: {}]   ;;  %s1474_s7 = inlined_call_operand.hbm [shape: f32[4,1,128], index: 7, kind: output, shape index: {}]  }
   0x1   :  { %v12_v0 = vstv %s1473_s6 }
   0x2   :  { %13 = vst [vmem:[#allocation2] sm:$0x1] %v12_v0 }
   0x3   :  { %14 = vsyncpa [#allocation4], 0 }
   0x4   :  { %16 = vsyncpa [#allocation4 + $0x1], 0  ;;  %s1262_s26 = smov 0   ;;  %s1264_s27 = smov 0  }
   0x5   :  { %s1266_s28 = smov 0   ;;  %s1268_s29 = smov 0  }
   0x6 LB: > { %s1283_s6 = sadd.s32 4294967295, %s1213_s29   ;;  %s941_s30 = sadd.s32 4294967294, %s1213_s29   ;;  %s1213_s29 = sphi %s1268_s29, %s1480_s29   ;;  %s1209_s28 = sphi %s1266_s28, %s1479_s28   ;;  %s1205_s27 = sphi %s1264_s27, %s1478_s27   ;;  %s1201_s26 = sphi %s1262_s26, %s1477_s26  }
   0x7   : > { %s1287_s8 = sadd.s32 1, %s1213_s29   ;;  %s181_s9 = sadd.s32 1, %s1209_s28 }
   0x8   : > { %s178_s10 = ssub.s32 %s1213_s29, %s1287_s8  ;;  %p191_p0 = scmp.ne.s32.totalorder %s1209_s28, %s1205_s27 }
   0x9   : > { %p179_p1 = scmp.eq.s32.totalorder %s178_s10, 0  ;;  %p192_p2 = scmp.eq.s32.totalorder %s1283_s6, 1 }
   0xa   : > { %p197_p3 = scmp.ne.s32.totalorder %s1205_s27, %s1201_s26  ;;  %p198_p4 = scmp.eq.s32.totalorder %s941_s30, 1 }
   0xb   : > { %s1298_s11 = scalar_select %p179_p1, %s1209_s28, %s181_s9  }
   0xc   : > { %p1300_p5 = por %p192_p2, %p191_p0  ;;  %p1304_p6 = por %p198_p4, %p197_p3 }
   0xd   : > { %p944_p7 = scmp.ge.s32.totalorder %s1213_s29, 1  ;;  %p242_p8 = scmp.lt.s32.totalorder %s1213_s29, 3 }
   0xf   : > { %p243_p9 = pnand %p944_p7, %p242_p8 }
  0x10   : > { %s946_s30 = sshll.u32 (!%p243_p9), %s1283_s6, 1  ;;  %s972_s17 = sshll.u32 (!%p243_p9), %s1283_s6, 5 }
  0x11   : > { %246 = sbr.rel (%p243_p9) target bundleno = 658 (0x292), region = 48  ;;  %p274_p10 = scmp.lt.s32.totalorder (!%p243_p9), %s946_s30, 3 }
  0x12   : > { %s1423_s21 = scalar_lea.hbm (!%p243_p9), %s1474_s7, %s972_s17  ;;  %s1216_s6 = smov (!%p243_p9), [#allocation3]  }
  0x13   : > { %s1157_s24 = sshll.u32 (!%p243_p9), %s1216_s6, 4  ;;  %s1158_s24 = int_to_ptr.vmem [resolvable:$false] %s1157_s24 }
  0x14   : > { %s1159_s25 = scalar_lea.vmem (!%p243_p9), %s1158_s24, 64 }
  0x16   : > { %v286_v1 = vld [vmem:[%s1469_s2 + $0x18] sm:$0xff]  ;;  %v1215_v3 = vmov 0   ;;  %v281_v4 = vld [vmem:[%s1468_s1 + $0x10] sm:$0xff]  ;;  %v280_v5 = vld [vmem:[%s1468_s1 + $0x8] sm:$0xff]  ;;  %vm387_vm0 = vcmask 261120   ;;  %s1482_s30 = smov (!%p274_p10, %s946_s30), 3 }
  0x17   : > { %v282_v2 = vld [vmem:[%s1468_s1 + $0x18] sm:$0xff]  ;;  %1104 = vset.pattern.permute.xlu1 %v1215_v3  ;;  %1103 = vset.pattern.permute.xlu0 %v1215_v3  ;;  %v285_v6 = vld [vmem:[%s1469_s2 + $0x10] sm:$0xff]  ;;  %v279_v7 = vld [vmem:[%s1468_s1] sm:$0xff]  ;;  %s276_s14 = scalar_lea.vmem %s1467_s0, %s1482_s30 }
  0x18   : > { %356 = vperm.xlu1 %1104, %v286_v1   ;;  %326 = vperm.xlu0 %1103, %v282_v2   ;;  %v284_v8 = vld [vmem:[%s1469_s2 + $0x8] sm:$0xff]  ;;  %v283_v9 = vld [vmem:[%s1469_s2] sm:$0xff]  ;;  %v303_v10 = vld [vmem:[%s1471_s4 + $0x18] sm:$0xff] }
  0x19   : > { %v302_v11 = vld [vmem:[%s1471_s4 + $0x10] sm:$0xff]  ;;  %v301_v12 = vld [vmem:[%s1471_s4 + $0x8] sm:$0xff]  ;;  %v300_v13 = vld [vmem:[%s1471_s4] sm:$0xff] }
  0x1a   : > { %v304_v14 = vld [vmem:[%s1471_s4 + $0x20] sm:$0xff]  ;;  %v305_v15 = vld [vmem:[%s1471_s4 + $0x28] sm:$0xff]  ;;  %v306_v16 = vld [vmem:[%s1471_s4 + $0x30] sm:$0xff] }
  0x1b   : > { %v307_v17 = vld [vmem:[%s1471_s4 + $0x38] sm:$0xff]  ;;  %v1361_v18 = vld [vmem:[%s1470_s3] sm:$0xff]  ;;  %v288_v20 = vld [vmem:[%s1472_s5 + $0x8] sm:$0xff] }
  0x1c   : > { %321 = vperm.xlu0 %1103, %v281_v4   ;;  %316 = vperm.xlu1 %1104, %v280_v5   ;;  %v287_v19 = vld [vmem:[%s1472_s5] sm:$0xff]  ;;  %v289_v21 = vld [vmem:[%s1472_s5 + $0x10] sm:$0xff]  ;;  %v290_v22 = vld [vmem:[%s1472_s5 + $0x18] sm:$0xff] }
  0x1d   : > { %1013 = vmatprep.mubr.msk.f32.mxu0 %vm387_vm0, %v1361_v18  ;;  %v291_v23 = vld [vmem:[#allocation2] sm:$0x1]  ;;  %v957_v32 = vld [vmem:[%s276_s14 + $0x1] ss:$0 sm:$0xff]  ;;  %v293_v54 = vld [vmem:[%s1470_s3 + $0x8] sm:$0xff] }
  0x1e   : > { %v947_v24 = vld [vmem:[%s276_s14] ss:$0 sm:$0xff]  ;;  %v294_v55 = vld [vmem:[%s1470_s3 + $0x10] sm:$0xff]  ;;  %v295_v58 = vld [vmem:[%s1470_s3 + $0x18] sm:$0xff]  ;;  %s270_s14 = sand.u32 1, %s1205_s27  }
  0x1f   : > { %v296_v61 = vld [vmem:[%s1470_s3 + $0x20] sm:$0xff]  ;;  %s945_s15 = sshll.u32 %s270_s14, 1  ;;  %s1427_s22 = scalar_lea.sflag [#allocation4], %s270_s14 }
  0x20   : > { %351 = vperm.xlu0 %1103, %v285_v6   ;;  %311 = vperm.xlu1 %1104, %v279_v7   ;;  %s272_s16 = scalar_lea.vmem [#allocation3], %s945_s15 }
  0x21   : > { %1027 = vmatprep.mubr.msk.f32.mxu1 %vm387_vm0, %v296_v61  ;;  %s882_s18 = sshll.u32 %s272_s16, 4  ;;  %s1425_s18 = int_to_ptr.vmem [resolvable:$true] %s882_s18 }
  0x22   : > { %s1153_s23 = scalar_lea.vmem %s1425_s18, 32  ;;  %p1160_p0 = scmp.lt.s32.totalorder %s1425_s18, %s1158_s24 }
  0x23   : > { %p1154_p11 = scmp.ne.s32.totalorder %s1425_s18, %s1153_s23  ;;  %p1161_p1 = scmp.lt.s32.totalorder %s1159_s25, %s1153_s23 }
  0x24   : > { %346 = vperm.xlu0 %1103, %v284_v8   ;;  %341 = vperm.xlu1 %1104, %v283_v9  }
  0x25   : > { %p1155_p12 = pnand %p1154_p11, %p1300_p5  ;;  %p1162_p2 = por %p1161_p1, %p1160_p0 }
  0x27   : > { %p1156_p13 = pneg %p1155_p12 }
  0x28   : > { %384 = vperm.xlu0 %1103, %v303_v10   ;;  %379 = vperm.xlu1 %1104, %v302_v11  }
  0x29   : > { %p1163_p3 = pnand %p1162_p2, %p1156_p13 }
  0x2c   : > { %374 = vperm.xlu0 %1103, %v301_v12   ;;  %369 = vperm.xlu1 %1104, %v300_v13  }
  0x30   : > { %491 = vperm.xlu0 %1103, %v304_v14   ;;  %496 = vperm.xlu1 %1104, %v305_v15  }
  0x34   : > { %501 = vperm.xlu0 %1103, %v306_v16   ;;  %506 = vperm.xlu1 %1104, %v307_v17  }
  0x38   : > { %612 = vperm.xlu0 %1103, %v287_v19   ;;  %617 = vperm.xlu1 %1104, %v288_v20  }
  0x3c   : > { %622 = vperm.xlu0 %1103, %v289_v21   ;;  %627 = vperm.xlu1 %1104, %v290_v22   ;;  %v297_v22 = vld [vmem:[%s1470_s3 + $0x28] sm:$0xff] }
  0x40   : > { %645 = vperm.xlu0 %1103, %v291_v23   ;;  %v298_v23 = vld [vmem:[%s1470_s3 + $0x30] sm:$0xff] }
  0x93   : > { %v357_v25 = vpop.permute.xlu1 %356  ;;  %v327_v26 = vpop.permute.xlu0 %326 }
  0x94   : > { %v338_v27 = vmul.f32 %v947_v24, %v327_v26  ;;  %v665_v36 = vmul.f32 %v957_v32, %v327_v26  ;;  %v299_v26 = vld [vmem:[%s1470_s3 + $0x38] sm:$0xff] }
  0x96   : > { %v362_v28 = vadd.f32 %v357_v25, %v338_v27  ;;  %v669_v43 = vadd.f32 %v665_v36, %v357_v25 }
  0x97   : > { %v322_v29 = vpop.permute.xlu0 %321  ;;  %v317_v30 = vpop.permute.xlu1 %316 }
  0x98   : > { %1105 = vtanh.f32 %v362_v28  ;;  %v337_v31 = vmul.f32 %v947_v24, %v322_v29  ;;  %v336_v37 = vmul.f32 %v947_v24, %v317_v30  ;;  %v664_v44 = vmul.f32 %v957_v32, %v322_v29 }
  0x99   : > { %v663_v45 = vmul.f32 %v957_v32, %v317_v30 }
  0x9b   : > { %v352_v33 = vpop.permute.xlu0 %351  ;;  %v312_v34 = vpop.permute.xlu1 %311 }
  0x9c   : > { %v361_v35 = vadd.f32 %v352_v33, %v337_v31  ;;  %v335_v38 = vmul.f32 %v947_v24, %v312_v34  ;;  %v668_v46 = vadd.f32 %v664_v44, %v352_v33  ;;  %v662_v48 = vmul.f32 %v957_v32, %v312_v34 }
  0x9e   : > { %1107 = vtanh.f32 %v361_v35 }
  0x9f   : > { %v347_v39 = vpop.permute.xlu0 %346  ;;  %v342_v40 = vpop.permute.xlu1 %341 }
  0xa0   : > { %v360_v41 = vadd.f32 %v347_v39, %v336_v37  ;;  %v359_v42 = vadd.f32 %v342_v40, %v335_v38  ;;  %v667_v49 = vadd.f32 %v663_v45, %v347_v39  ;;  %v666_v50 = vadd.f32 %v662_v48, %v342_v40 }
  0xa2   : > { %1109 = vtanh.f32 %v360_v41 }
  0xa3   : > { %1111 = vtanh.f32 %v359_v42  ;;  %v385_v62 = vpop.permute.xlu0 %384  ;;  %v380_v0 = vpop.permute.xlu1 %379 }
  0xa4   : > { %1113 = vtanh.f32 %v669_v43 }
  0xa5   : > { %v1106_v47 = vpop.eup %1105  ;;  %1115 = vtanh.f32 %v668_v46 }
  0xa6   : > { %1005 = vmatprep.subr.mxu0 %v1106_v47  ;;  %1117 = vtanh.f32 %v667_v49 }
  0xa7   : > { %1006 = vmatpush3.msra.mxu0 %v1106_v47  ;;  %1119 = vtanh.f32 %v666_v50  ;;  %v375_v4 = vpop.permute.xlu0 %374  ;;  %v370_v8 = vpop.permute.xlu1 %369 }
  0xab   : > { %v1108_v51 = vpop.eup %1107  ;;  %v497_v29 = vpop.permute.xlu1 %496 }
  0xac   : > { %1007 = vmatprep.subr.mxu0 %v1108_v51  ;;  %v492_v30 = vpop.permute.xlu0 %491 }
  0xad   : > { %1008 = vmatpush3.msra.mxu0 %v1108_v51 }
  0xaf   : > { %v1110_v52 = vpop.eup %1109  ;;  %v507_v35 = vpop.permute.xlu1 %506 }
  0xb0   : > { %1009 = vmatprep.subr.mxu0 %v1110_v52  ;;  %v1112_v53 = vpop.eup %1111  ;;  %v502_v38 = vpop.permute.xlu0 %501 }
  0xb1   : > { %1010 = vmatpush3.msra.mxu0 %v1110_v52  ;;  %v1114_v56 = vpop.eup %1113 }
  0xb2   : > { %1011 = vmatprep.subr.mxu0 %v1112_v53  ;;  %v1116_v57 = vpop.eup %1115 }
  0xb3   : > { %1012 = vmatpush3.msra.mxu0 %v1112_v53  ;;  %v1118_v59 = vpop.eup %1117  ;;  %v618_v52 = vpop.permute.xlu1 %617 }
  0xb4   : > { %1014 = vmatmul.mubr.msk.f32.vlgmr.msra.gmra.mxu0 %vm387_vm0, %v293_v54  ;;  %1033 = vmatprep.subr.mxu0 %v1114_v56  ;;  %v1120_v60 = vpop.eup %1119  ;;  %v613_v49 = vpop.permute.xlu0 %612 }
  0xb5   : > { %1034 = vmatpush3.msra.mxu0 %v1114_v56  ;;  %1016 = vmatprep.mubr.msk.f32.mxu0 %vm387_vm0, %v294_v55 }
  0xb6   : > { %1035 = vmatprep.subr.mxu0 %v1116_v57 }
  0xb7   : > { %1036 = vmatpush3.msra.mxu0 %v1116_v57 }
  0xb8   : > { %1017 = vmatmul.mubr.msk.f32.gmra.mxu0 %vm387_vm0, %v295_v58  ;;  %1037 = vmatprep.subr.mxu0 %v1118_v59  ;;  %v623_v57 = vpop.permute.xlu0 %622 }
  0xb9   : > { %1038 = vmatpush3.msra.mxu0 %v1118_v59  ;;  %1041 = vmatprep.mubr.msk.f32.mxu0 %vm387_vm0, %v1361_v18 }
  0xba   : > { %1039 = vmatprep.subr.mxu0 %v1120_v60 }
  0xbb   : > { %1040 = vmatpush3.msra.mxu0 %v1120_v60  ;;  %v628_v60 = vpop.permute.xlu1 %627 }
  0xbc   : > { %1042 = vmatmul.mubr.msk.f32.vlgmr.msra.gmra.mxu0 %vm387_vm0, %v293_v54 }
  0xbd   : > { %1044 = vmatprep.mubr.msk.f32.mxu0 %vm387_vm0, %v294_v55 }
  0xc0   : > { %1045 = vmatmul.mubr.msk.f32.gmra.mxu0 %vm387_vm0, %v295_v58 }
 0x174   : > { %v1015_v63 = vpop.f32.mrf.mxu0 }
 0x175   : > { %v472_v6 = vadd.f32 %v1015_v63, %v375_v4 }
 0x176   : > { %v466_v1 = vpop.f32.mrf.mxu0 }
 0x177   : > { %v467_v10 = vadd.f32 %v466_v1, %v370_v8  ;;  %v648_v1 = vlaneseq }
 0x178   : > { %v1018_v2 = vpop.f32.mrf.mxu0 }
 0x179   : > { %v482_v3 = vadd.f32 %v1018_v2, %v385_v62 }
 0x17a   : > { %v476_v5 = vpop.f32.mrf.mxu0 }
 0x17b   : > { %1121 = vtanh.f32 %v482_v3  ;;  %v477_v7 = vadd.f32 %v476_v5, %v380_v0 }
 0x17c   : > { %v1043_v9 = vpop.f32.mrf.mxu0 }
 0x17d   : > { %1123 = vtanh.f32 %v477_v7  ;;  %v746_v15 = vadd.f32 %v1043_v9, %v375_v4 }
 0x17e   : > { %v740_v11 = vpop.f32.mrf.mxu0  ;;  %1125 = vtanh.f32 %v472_v6 }
 0x17f   : > { %1127 = vtanh.f32 %v467_v10  ;;  %v741_v17 = vadd.f32 %v740_v11, %v370_v8  ;;  %v649_v8 = vshrl.u32 %v648_v1, 7 }
 0x180   : > { %v1046_v12 = vpop.f32.mrf.mxu0 }
 0x181   : > { %v756_v13 = vadd.f32 %v1046_v12, %v385_v62 }
 0x182   : > { %v750_v14 = vpop.f32.mrf.mxu0 }
 0x183   : > { %1129 = vtanh.f32 %v756_v13  ;;  %v751_v16 = vadd.f32 %v750_v14, %v380_v0 }
 0x185   : > { %1131 = vtanh.f32 %v751_v16 }
 0x186   : > { %1133 = vtanh.f32 %v746_v15  ;;  %v650_v15 = vsub.s32 0, %v649_v8 }
 0x187   : > { %1135 = vtanh.f32 %v741_v17 }
 0x188   : > { %v1122_v18 = vpop.eup %1121 }
 0x189   : > { %1019 = vmatprep.subr.mxu1 %v1122_v18 }
 0x18a   : > { %v1124_v19 = vpop.eup %1123  ;;  %1020 = vmatpush3.msra.mxu1 %v1122_v18  ;;  %v646_v18 = vpop.permute.xlu0 %645 }
 0x18b   : > { %1021 = vmatprep.subr.mxu1 %v1124_v19  ;;  %v1126_v20 = vpop.eup %1125 }
 0x18c   : > { %1022 = vmatpush3.msra.mxu1 %v1124_v19  ;;  %v1128_v21 = vpop.eup %1127 }
 0x18d   : > { %1023 = vmatprep.subr.mxu1 %v1126_v20 }
 0x18e   : > { %1024 = vmatpush3.msra.mxu1 %v1126_v20 }
 0x18f   : > { %1025 = vmatprep.subr.mxu1 %v1128_v21 }
 0x190   : > { %v1130_v24 = vpop.eup %1129  ;;  %1026 = vmatpush3.msra.mxu1 %v1128_v21  ;;  %v651_v21 = vrot.slane %v646_v18, %v650_v15 }
 0x191   : > { %1028 = vmatmul.mubr.msk.f32.vlgmr.msra.gmra.mxu1 %vm387_vm0, %v297_v22  ;;  %1047 = vmatprep.subr.mxu1 %v1130_v24 }
 0x192   : > { %v1132_v25 = vpop.eup %1131  ;;  %1048 = vmatpush3.msra.mxu1 %v1130_v24  ;;  %1030 = vmatprep.mubr.msk.f32.mxu1 %vm387_vm0, %v298_v23 }
 0x193   : > { %1049 = vmatprep.subr.mxu1 %v1132_v25  ;;  %v1134_v27 = vpop.eup %1133 }
 0x194   : > { %1050 = vmatpush3.msra.mxu1 %v1132_v25  ;;  %v1136_v28 = vpop.eup %1135 }
 0x195   : > { %1031 = vmatmul.mubr.msk.f32.gmra.mxu1 %vm387_vm0, %v299_v26  ;;  %1051 = vmatprep.subr.mxu1 %v1134_v27 }
 0x196   : > { %1052 = vmatpush3.msra.mxu1 %v1134_v27  ;;  %1055 = vmatprep.mubr.msk.f32.mxu1 %vm387_vm0, %v296_v61 }
 0x197   : > { %1053 = vmatprep.subr.mxu1 %v1136_v28 }
 0x198   : > { %1054 = vmatpush3.msra.mxu1 %v1136_v28 }
 0x199   : > { %1056 = vmatmul.mubr.msk.f32.vlgmr.msra.gmra.mxu1 %vm387_vm0, %v297_v22 }
 0x19a   : > { %1058 = vmatprep.mubr.msk.f32.mxu1 %vm387_vm0, %v298_v23 }
 0x19d   : > { %1059 = vmatmul.mubr.msk.f32.gmra.mxu1 %vm387_vm0, %v299_v26 }
 0x251   : > { %v1029_v31 = vpop.f32.mrf.mxu1 }
 0x252   : > { %v593_v32 = vadd.f32 %v1029_v31, %v497_v29 }
 0x253   : > { %v587_v33 = vpop.f32.mrf.mxu1 }
 0x254   : > { %v588_v34 = vadd.f32 %v587_v33, %v492_v30  ;;  %1137 = vtanh.f32 %v593_v32 }
 0x255   : > { %v1032_v36 = vpop.f32.mrf.mxu1 }
 0x256   : > { %1139 = vtanh.f32 %v588_v34  ;;  %v603_v37 = vadd.f32 %v1032_v36, %v507_v35 }
 0x257   : > { %v597_v39 = vpop.f32.mrf.mxu1 }
 0x258   : > { %v598_v40 = vadd.f32 %v597_v39, %v502_v38  ;;  %1141 = vtanh.f32 %v603_v37 }
 0x259   : > { %v1057_v41 = vpop.f32.mrf.mxu1 }
 0x25a   : > { %1143 = vtanh.f32 %v598_v40  ;;  %v835_v42 = vadd.f32 %v1057_v41, %v497_v29 }
 0x25b   : > { %v829_v43 = vpop.f32.mrf.mxu1 }
 0x25c   : > { %v830_v44 = vadd.f32 %v829_v43, %v492_v30  ;;  %1145 = vtanh.f32 %v835_v42 }
 0x25d   : > { %v1060_v45 = vpop.f32.mrf.mxu1 }
 0x25e   : > { %1147 = vtanh.f32 %v830_v44  ;;  %v845_v46 = vadd.f32 %v1060_v45, %v507_v35 }
 0x25f   : > { %v839_v47 = vpop.f32.mrf.mxu1 }
 0x260   : > { %v840_v48 = vadd.f32 %v839_v47, %v502_v38  ;;  %1149 = vtanh.f32 %v845_v46 }
 0x261   : > { %v1138_v50 = vpop.eup %1137 }
 0x262   : > { %1151 = vtanh.f32 %v840_v48  ;;  %v631_v55 = vmul.f32 %v1138_v50, %v618_v52 }
 0x263   : > { %v1140_v51 = vpop.eup %1139 }
 0x264   : > { %v630_v53 = vmul.f32 %v1140_v51, %v613_v49 }
 0x265   : > { %v1142_v54 = vpop.eup %1141 }
 0x266   : > { %v634_v58 = vadd.f32 %v631_v55, %v630_v53  ;;  %v633_v62 = vmul.f32 %v1142_v54, %v628_v60 }
 0x267   : > { %v1144_v56 = vpop.eup %1143 }
 0x268   : > { %v632_v59 = vmul.f32 %v1144_v56, %v623_v57 }
 0x269   : > { %v1146_v61 = vpop.eup %1145 }
 0x26a   : > { %v635_v63 = vadd.f32 %v634_v58, %v632_v59  ;;  %v853_v6 = vmul.f32 %v1146_v61, %v618_v52 }
 0x26b   : > { %v1148_v0 = vpop.eup %1147 }
 0x26c   : > { %v636_v2 = vadd.f32 %v635_v63, %v633_v62  ;;  %v852_v3 = vmul.f32 %v1148_v0, %v613_v49 }
 0x26d   : > { %v1150_v4 = vpop.eup %1149 }
 0x26e   : > { %v637_v5 = vrot.slane %v636_v2, 4  ;;  %v856_v9 = vadd.f32 %v853_v6, %v852_v3  ;;  %v855_v12 = vmul.f32 %v1150_v4, %v628_v60 }
 0x26f   : > { %v1152_v7 = vpop.eup %1151 }
 0x270   : > { %v854_v10 = vmul.f32 %v1152_v7, %v623_v57  ;;  %v638_v11 = vadd.f32 %v637_v5, %v636_v2 }
 0x272   : > { %v857_v13 = vadd.f32 %v856_v9, %v854_v10  ;;  %v639_v14 = vrot.slane %v638_v11, 2 }
 0x274   : > { %v858_v16 = vadd.f32 %v857_v13, %v855_v12  ;;  %v640_v17 = vadd.f32 %v639_v14, %v638_v11 }
 0x276   : > { %v859_v19 = vrot.slane %v858_v16, 4  ;;  %v641_v20 = vrot.slane %v640_v17, 1 }
 0x278   : > { %v642_v22 = vadd.f32 %v641_v20, %v640_v17  ;;  %v860_v23 = vadd.f32 %v859_v19, %v858_v16 }
 0x27a   : > { %v652_v24 = vadd.f32 %v651_v21, %v642_v22  ;;  %v861_v25 = vrot.slane %v860_v23, 2 }
 0x27c   : > { %653 = vst [vmem:[%s272_s16] sm:$0x1] %v652_v24  ;;  %v862_v26 = vadd.f32 %v861_v25, %v860_v23 }
 0x27e   : > { %v863_v27 = vrot.slane %v862_v26, 1 }
 0x280   : > { %v864_v28 = vadd.f32 %v863_v27, %v862_v26 }
 0x282   : > { %v865_v29 = vadd.f32 %v864_v28, %v651_v21 }
 0x284   : > { %966 = vst [vmem:[%s272_s16 + $0x1] sm:$0x1] %v865_v29 }
 0x285   : > { %1166 = shalt.err (!%p1163_p3)
}
 0x286   : > { %s1167_s30 = scalar_lea.hbm %s1423_s21, 32  ;;  %s1171_s14 = scalar_lea.hbm %s1474_s7, 64 }
 0x287   : > { %p1168_p4 = scmp.ne.s32.totalorder %s1423_s21, %s1167_s30  ;;  %p1172_p9 = scmp.lt.s32.totalorder %s1423_s21, %s1474_s7 }
 0x288   : > { %p1173_p10 = scmp.lt.s32.totalorder %s1171_s14, %s1167_s30 }
 0x289   : > { %p1169_p7 = pnand %p1168_p4, %p1300_p5 }
 0x28a   : > { %p1174_p11 = por %p1173_p10, %p1172_p9 }
 0x28b   : > { %p1170_p8 = pneg %p1169_p7 }
 0x28d   : > { %p1175_p12 = pnand %p1174_p11, %p1170_p8 }
 0x28f   : > { %1178 = shalt.err (!%p1175_p12)
}
 0x290   : > { %s1217_s17 = smov 16   ;;  %s1218_s19 = smov 1  }
 0x291   : > { %1061 = dma.vmem_to_hbm [thread:$0]  (%p1300_p5), %s1425_s18, 32, %s1423_s21, %s1427_s22, %s1217_s17, %s1217_s17, %s1218_s19  }
 0x292 PF: > { %p1067_p13 = scmp.ge.s32.totalorder %s1213_s29, 2  ;;  %s897_s20 = sand.u32 1, %s1201_s26  }
 0x293   : > { %s898_s23 = scalar_lea.sflag [#allocation4], %s897_s20 }
 0x294   : > { %p1064_p0 = pnand %p1067_p13, %p1304_p6 }
 0x296   : > { %p1065_p1 = pneg %p1064_p0 }
 0x298   : > { %1196 = dma.done.wait (%p1065_p1), %s898_s23, 32  }
 0x299   : > { %1198 = vsyncadd (%p1065_p1), %s898_s23, 4294967264  ;;  %p19_p2 = scmp.ge.s32.totalorder %s1287_s8, 4   ;;  %s1477_s26 = smov %s1205_s27 }
 0x29a   : > { %s1478_s27 = smov %s1209_s28  ;;  %s1479_s28 = smov %s1298_s11 }
 0x29b   : > { %s1480_s29 = smov %s1287_s8  ;;  %21 = sbr.rel (!%p19_p2) target bundleno = 6 (0x6), region = 85 }
 0x2a0   :  { %903 = vsyncpa [#allocation4], 1 }
 0x2a1   :  { %905 = vsyncpa [#allocation4 + $0x1], 1 }

</bundles_post_ra>
